<compile_context>
chip_gen: v5e
topology: v5e:2x2
jax: 0.10.0
libtpu: 0.0.40
codegen_flags: <defaults>
</compile_context>

<pallas_src>
import math

import jax
import jax.numpy as jnp
from jax.experimental import pallas as pl
from jax.experimental.pallas import tpu as pltpu

# ---------------------------------------------------------------------------
# Model dims (small, consistent with the module's __init__)
# ---------------------------------------------------------------------------
L = 8            # sequence length
N = 2            # batch size
D_MODEL = 32     # d_model
NHEAD = 4        # nhead
D_FF = 64        # dim_feedforward
HEAD_DIM = D_MODEL // NHEAD
LN_EPS = 1e-5

# ---------------------------------------------------------------------------
# Packed-parameter tile layout: one f32 tile of shape (PARAM_ROWS, 192)
# ---------------------------------------------------------------------------
W_FUSED_COLS = 2 * D_MODEL + NHEAD * D_MODEL   # 192: [Q*scale | K | Wvo_0..Wvo_3]
ROW_WF = 0                                     # rows   0: 32, lanes 0:192  fused proj
ROW_W1 = ROW_WF + D_MODEL                      # rows  32: 64, lanes 0:64   linear1
ROW_W2 = ROW_W1 + D_MODEL                      # rows  64:128, lanes 0:32   linear2
ROW_VEC = ROW_W2 + D_FF                        # rows 128:136 small vectors
ROW_MASK = ROW_VEC + 8                         # rows 136:152 additive batch mask (16x16)
PARAM_ROWS = ROW_MASK + L * N                  # 152


# ---------------------------------------------------------------------------
# Pallas kernel: single invocation, whole problem resident in VMEM
# ---------------------------------------------------------------------------
def _encoder_layer_kernel(x_ref, p_ref, o_ref):
    # x_ref: (L*N, E)  rows interleave batch: row r -> (seq = r//N, batch = r%N)
    # p_ref: (PARAM_ROWS, 192) packed parameters (see layout above)
    # o_ref: (L*N, E)
    rows = x_ref.shape[0]                      # L*N = 16 (static)

    x = x_ref[...]                             # (16, 32)

    # ---- static ref views into the packed parameter tile (free) ----------
    wf = p_ref[ROW_WF:ROW_WF + D_MODEL, :]                         # (32, 192)
    w1 = p_ref[ROW_W1:ROW_W1 + D_MODEL, 0:D_FF]                    # (32, 64)
    w2 = p_ref[ROW_W2:ROW_W2 + D_FF, 0:D_MODEL]                    # (64, 32)
    b_fused = p_ref[ROW_VEC + 0:ROW_VEC + 1, :]                    # (1, 192)
    bo  = p_ref[ROW_VEC + 1:ROW_VEC + 2, 0:D_MODEL]                # (1, 32)
    b1  = p_ref[ROW_VEC + 2:ROW_VEC + 3, 0:D_FF]                   # (1, 64)
    b2  = p_ref[ROW_VEC + 3:ROW_VEC + 4, 0:D_MODEL]                # (1, 32)
    g1  = p_ref[ROW_VEC + 4:ROW_VEC + 5, 0:D_MODEL]
    be1 = p_ref[ROW_VEC + 5:ROW_VEC + 6, 0:D_MODEL]
    g2  = p_ref[ROW_VEC + 6:ROW_VEC + 7, 0:D_MODEL]
    be2 = p_ref[ROW_VEC + 7:ROW_VEC + 8, 0:D_MODEL]
    mask_bias = p_ref[ROW_MASK:ROW_MASK + rows, 0:rows]            # (16, 16)

    # ---- fused QKV' projection on BOTH batch elements at once ------------
    # columns: [Q (pre-scaled) | K | V'_0 | V'_1 | V'_2 | V'_3] where
    # V'_h = X @ (Wv_h @ Wo_h) + bv_h @ Wo_h  (out-projection folded in).
    qkv = jnp.dot(x, wf, preferred_element_type=jnp.float32) + b_fused  # (16,192)

    # ---- multi-head self-attention with block-diagonal batch mask --------
    attn = jnp.zeros((rows, D_MODEL), jnp.float32)
    for h in range(NHEAD):                     # static unroll over 4 heads
        lo = h * HEAD_DIM
        qh = qkv[:, lo:lo + HEAD_DIM]                                   # (16, 8)
        kh = qkv[:, D_MODEL + lo:D_MODEL + lo + HEAD_DIM]               # (16, 8)
        vph = qkv[:, 2 * D_MODEL + h * D_MODEL:
                  2 * D_MODEL + (h + 1) * D_MODEL]                      # (16, 32)

        s = jax.lax.dot_general(               # (16,16)  q @ k^T, scale pre-folded
            qh, kh, dimension_numbers=(((1,), (1,)), ((), ())),
            preferred_element_type=jnp.float32)
        s = s + mask_bias                      # forbid cross-batch attention
        s = s - jnp.max(s, axis=-1, keepdims=True)
        p = jnp.exp(s)
        p = p * pl.reciprocal(jnp.sum(p, axis=-1, keepdims=True))
        attn = attn + jnp.dot(p, vph, preferred_element_type=jnp.float32)
    attn = attn + bo

    # ---- residual + LayerNorm1 (one-pass stats) ---------------------------
    # TODO(synk): dropout1 is stochastic; modelled as identity (eval mode).
    x1 = x + attn
    mu1 = jnp.mean(x1, axis=-1, keepdims=True)
    var1 = jnp.mean(x1 * x1, axis=-1, keepdims=True) - mu1 * mu1
    x1n = (x1 - mu1) * jax.lax.rsqrt(var1 + LN_EPS) * g1 + be1

    # ---- feed-forward (dropout == identity) -------------------------------
    h1 = jnp.maximum(
        jnp.dot(x1n, w1, preferred_element_type=jnp.float32) + b1, 0.0)
    ff = jnp.dot(h1, w2, preferred_element_type=jnp.float32) + b2

    # ---- residual + LayerNorm2 (dropout2 == identity) ----------------------
    x2 = x1n + ff
    mu2 = jnp.mean(x2, axis=-1, keepdims=True)
    var2 = jnp.mean(x2 * x2, axis=-1, keepdims=True) - mu2 * mu2
    o_ref[...] = (x2 - mu2) * jax.lax.rsqrt(var2 + LN_EPS) * g2 + be2


# ---------------------------------------------------------------------------
# Wrapper (only free row-major reshapes; 2 kernel inputs total)
# ---------------------------------------------------------------------------
@jax.jit
def transformer_encoder_layer(src, params):
    """src: (L, N, E) float32 -> (L, N, E) float32 (PyTorch layout)."""
    seq, n, e = src.shape
    x2d = src.reshape(seq * n, e)              # free flatten: batch -> sublanes

    out2d = pl.pallas_call(
        _encoder_layer_kernel,
        out_shape=jax.ShapeDtypeStruct((seq * n, e), jnp.float32),
        in_specs=[pl.BlockSpec(memory_space=pltpu.MemorySpace.VMEM),
                  pl.BlockSpec(memory_space=pltpu.MemorySpace.VMEM)],
        out_specs=pl.BlockSpec(memory_space=pltpu.MemorySpace.VMEM),
    )(x2d, params)

    return out2d.reshape(seq, n, e)            # free reshape back to (L, N, E)


# ---------------------------------------------------------------------------
# Deterministic parameters (PyTorch layout) + one-time packing for the kernel
# ---------------------------------------------------------------------------
def init_torch_params(key):
    ks = jax.random.split(key, 8)
    s = 0.05
    p = {}
    p["in_proj_w"]  = jax.random.normal(ks[0], (3 * D_MODEL, D_MODEL), jnp.float32) * s
    p["in_proj_b"]  = jax.random.normal(ks[1], (3 * D_MODEL,), jnp.float32) * s
    p["out_proj_w"] = jax.random.normal(ks[2], (D_MODEL, D_MODEL), jnp.float32) * s
    p["out_proj_b"] = jax.random.normal(ks[3], (D_MODEL,), jnp.float32) * s
    p["lin1_w"]     = jax.random.normal(ks[4], (D_FF, D_MODEL), jnp.float32) * s
    p["lin1_b"]     = jax.random.normal(ks[5], (D_FF,), jnp.float32) * s
    p["lin2_w"]     = jax.random.normal(ks[6], (D_MODEL, D_FF), jnp.float32) * s
    p["lin2_b"]     = jax.random.normal(ks[7], (D_MODEL,), jnp.float32) * s
    p["ln1_g"] = jnp.ones((D_MODEL,), jnp.float32)
    p["ln1_b"] = jnp.zeros((D_MODEL,), jnp.float32)
    p["ln2_g"] = jnp.ones((D_MODEL,), jnp.float32)
    p["ln2_b"] = jnp.zeros((D_MODEL,), jnp.float32)
    return p


def pack_kernel_params(tp):
    """Fuse QKV, fold softmax scale + out-projection, pack everything into one tile."""
    scale = 1.0 / math.sqrt(HEAD_DIM)
    wq = tp["in_proj_w"][:D_MODEL].T * scale            # (E, E), scale folded into Q
    wk = tp["in_proj_w"][D_MODEL:2 * D_MODEL].T         # (E, E)
    wv = tp["in_proj_w"][2 * D_MODEL:].T                # (E, E)
    wo = tp["out_proj_w"].T                             # (E, E): y = a @ wo
    bq = tp["in_proj_b"][:D_MODEL] * scale
    bk = tp["in_proj_b"][D_MODEL:2 * D_MODEL]
    bv = tp["in_proj_b"][2 * D_MODEL:]

    # Fold the out-projection into the value projection per head:
    #   Wvo_h = Wv_h @ Wo_h   (E, E),   bvo_h = bv_h @ Wo_h   (E,)
    wvo, bvo = [], []
    for h in range(NHEAD):
        lo = h * HEAD_DIM
        wo_h = wo[lo:lo + HEAD_DIM, :]                  # (Dh, E)
        wvo.append(wv[:, lo:lo + HEAD_DIM] @ wo_h)      # (E, E)
        bvo.append(bv[lo:lo + HEAD_DIM] @ wo_h)         # (E,)
    w_fused = jnp.concatenate([wq, wk] + wvo, axis=1)   # (E, 2E + H*E) = (32, 192)
    b_fused = jnp.concatenate([bq, bk] + bvo)           # (192,)

    w1 = tp["lin1_w"].T                                 # (E, D_FF)
    w2 = tp["lin2_w"].T                                 # (D_FF, E)

    # Block-diagonal additive batch mask for interleaved rows (row % N == col % N).
    r = jnp.arange(L * N)[:, None]
    c = jnp.arange(L * N)[None, :]
    mask_bias = jnp.where((r % N) == (c % N), 0.0, -1e30).astype(jnp.float32)

    params = jnp.zeros((PARAM_ROWS, W_FUSED_COLS), jnp.float32)
    params = params.at[ROW_WF:ROW_WF + D_MODEL, :].set(w_fused)
    params = params.at[ROW_W1:ROW_W1 + D_MODEL, 0:D_FF].set(w1)
    params = params.at[ROW_W2:ROW_W2 + D_FF, 0:D_MODEL].set(w2)
    params = params.at[ROW_VEC + 0, :].set(b_fused)
    params = params.at[ROW_VEC + 1, 0:D_MODEL].set(tp["out_proj_b"])
    params = params.at[ROW_VEC + 2, 0:D_FF].set(tp["lin1_b"])
    params = params.at[ROW_VEC + 3, 0:D_MODEL].set(tp["lin2_b"])
    params = params.at[ROW_VEC + 4, 0:D_MODEL].set(tp["ln1_g"])
    params = params.at[ROW_VEC + 5, 0:D_MODEL].set(tp["ln1_b"])
    params = params.at[ROW_VEC + 6, 0:D_MODEL].set(tp["ln2_g"])
    params = params.at[ROW_VEC + 7, 0:D_MODEL].set(tp["ln2_b"])
    params = params.at[ROW_MASK:ROW_MASK + L * N, 0:L * N].set(mask_bias)
    return params


# ---------------------------------------------------------------------------
# Pure-JAX reference (mirrors the PyTorch forward in eval mode)
# ---------------------------------------------------------------------------
def reference(src, tp):
    x = jnp.transpose(src, (1, 0, 2))                   # (N, L, E)
    nb, seq, e = x.shape

    wq = tp["in_proj_w"][:D_MODEL].T
    wk = tp["in_proj_w"][D_MODEL:2 * D_MODEL].T
    wv = tp["in_proj_w"][2 * D_MODEL:].T
    bq = tp["in_proj_b"][:D_MODEL]
    bk = tp["in_proj_b"][D_MODEL:2 * D_MODEL]
    bv = tp["in_proj_b"][2 * D_MODEL:]
    wo = tp["out_proj_w"].T
    bo = tp["out_proj_b"]
    w1 = tp["lin1_w"].T
    b1 = tp["lin1_b"]
    w2 = tp["lin2_w"].T
    b2 = tp["lin2_b"]

    def ln(z, g, b):
        mu = jnp.mean(z, axis=-1, keepdims=True)
        var = jnp.mean((z - mu) ** 2, axis=-1, keepdims=True)
        return (z - mu) / jnp.sqrt(var + LN_EPS) * g + b

    q = x @ wq + bq
    k = x @ wk + bk
    v = x @ wv + bv
    qh = q.reshape(nb, seq, NHEAD, HEAD_DIM).transpose(0, 2, 1, 3)
    kh = k.reshape(nb, seq, NHEAD, HEAD_DIM).transpose(0, 2, 1, 3)
    vh = v.reshape(nb, seq, NHEAD, HEAD_DIM).transpose(0, 2, 1, 3)
    s = jnp.einsum("bhqd,bhkd->bhqk", qh, kh) / math.sqrt(HEAD_DIM)
    p = jax.nn.softmax(s, axis=-1)
    a = jnp.einsum("bhqk,bhkd->bhqd", p, vh).transpose(0, 2, 1, 3).reshape(nb, seq, e)
    a = a @ wo + bo
    x1 = ln(x + a, tp["ln1_g"], tp["ln1_b"])
    ff = jnp.maximum(x1 @ w1 + b1, 0.0) @ w2 + b2
    x2 = ln(x1 + ff, tp["ln2_g"], tp["ln2_b"])
    return jnp.transpose(x2, (1, 0, 2))


if __name__ == "__main__":
    key = jax.random.PRNGKey(0)
    k_src, k_par = jax.random.split(key)
    src = jax.random.normal(k_src, (L, N, D_MODEL), jnp.float32)

    torch_params = init_torch_params(k_par)
    kernel_params = pack_kernel_params(torch_params)

    out = transformer_encoder_layer(src, kernel_params)
    out = jax.block_until_ready(out)

    ref = reference(src, torch_params)
    assert out.shape == (L, N, D_MODEL)
    assert jnp.allclose(out, ref, atol=1e-4, rtol=1e-4), "mismatch vs reference"
    print("KERNEL_OK")
</pallas_src>

<mosaic_0001>
module attributes {stable_mosaic.version = 11 : i64} {
  func.func @_encoder_layer_kernel(%arg0: memref<16x32xf32, #tpu.memory_space<vmem>>, %arg1: memref<152x192xf32, #tpu.memory_space<vmem>>, %arg2: memref<16x32xf32, #tpu.memory_space<vmem>>) attributes {dimension_semantics = [], scalar_prefetch = 0 : i64, scratch_operands = 0 : i64, tpu.core_type = #tpu.core_type<tc>} {
    %c0 = arith.constant 0 : index
    %c0_0 = arith.constant 0 : index
    %0 = vector.load %arg0[%c0, %c0_0] : memref<16x32xf32, #tpu.memory_space<vmem>>, vector<16x32xf32>
    %c0_1 = arith.constant 0 : index
    %c0_2 = arith.constant 0 : index
    %1 = vector.load %arg1[%c0_1, %c0_2] : memref<152x192xf32, #tpu.memory_space<vmem>>, vector<32x192xf32>
    %c32 = arith.constant 32 : index
    %c0_3 = arith.constant 0 : index
    %2 = vector.load %arg1[%c32, %c0_3] : memref<152x192xf32, #tpu.memory_space<vmem>>, vector<32x64xf32>
    %c64 = arith.constant 64 : index
    %c0_4 = arith.constant 0 : index
    %3 = vector.load %arg1[%c64, %c0_4] : memref<152x192xf32, #tpu.memory_space<vmem>>, vector<64x32xf32>
    %c128 = arith.constant 128 : index
    %c0_5 = arith.constant 0 : index
    %4 = vector.load %arg1[%c128, %c0_5] : memref<152x192xf32, #tpu.memory_space<vmem>>, vector<1x192xf32>
    %c129 = arith.constant 129 : index
    %c0_6 = arith.constant 0 : index
    %5 = vector.load %arg1[%c129, %c0_6] : memref<152x192xf32, #tpu.memory_space<vmem>>, vector<1x32xf32>
    %c130 = arith.constant 130 : index
    %c0_7 = arith.constant 0 : index
    %6 = vector.load %arg1[%c130, %c0_7] : memref<152x192xf32, #tpu.memory_space<vmem>>, vector<1x64xf32>
    %c131 = arith.constant 131 : index
    %c0_8 = arith.constant 0 : index
    %7 = vector.load %arg1[%c131, %c0_8] : memref<152x192xf32, #tpu.memory_space<vmem>>, vector<1x32xf32>
    %c132 = arith.constant 132 : index
    %c0_9 = arith.constant 0 : index
    %8 = vector.load %arg1[%c132, %c0_9] : memref<152x192xf32, #tpu.memory_space<vmem>>, vector<1x32xf32>
    %c133 = arith.constant 133 : index
    %c0_10 = arith.constant 0 : index
    %9 = vector.load %arg1[%c133, %c0_10] : memref<152x192xf32, #tpu.memory_space<vmem>>, vector<1x32xf32>
    %c134 = arith.constant 134 : index
    %c0_11 = arith.constant 0 : index
    %10 = vector.load %arg1[%c134, %c0_11] : memref<152x192xf32, #tpu.memory_space<vmem>>, vector<1x32xf32>
    %c135 = arith.constant 135 : index
    %c0_12 = arith.constant 0 : index
    %11 = vector.load %arg1[%c135, %c0_12] : memref<152x192xf32, #tpu.memory_space<vmem>>, vector<1x32xf32>
    %c136 = arith.constant 136 : index
    %c0_13 = arith.constant 0 : index
    %12 = vector.load %arg1[%c136, %c0_13] : memref<152x192xf32, #tpu.memory_space<vmem>>, vector<16x16xf32>
    %cst = arith.constant dense<0.000000e+00> : vector<16x192xf32>
    %13 = tpu.matmul %0, %1, %cst {dimension_numbers = #tpu.dot_dimension_numbers<[1], [0], [0], [1], [0, 0, 1, 1], [], []>} : vector<16x32xf32>, vector<32x192xf32>, vector<16x192xf32> -> vector<16x192xf32>
    %14 = vector.broadcast %4 : vector<1x192xf32> to vector<16x192xf32>
    %15 = arith.addf %13, %14 : vector<16x192xf32>
    %cst_14 = arith.constant 0.000000e+00 : f32
    %16 = vector.broadcast %cst_14 : f32 to vector<16x32xf32>
    %17 = vector.extract_strided_slice %15 {offsets = [0, 0], sizes = [16, 8], strides = [1, 1]} : vector<16x192xf32> to vector<16x8xf32>
    %18 = vector.extract_strided_slice %15 {offsets = [0, 32], sizes = [16, 8], strides = [1, 1]} : vector<16x192xf32> to vector<16x8xf32>
    %19 = vector.extract_strided_slice %15 {offsets = [0, 64], sizes = [16, 32], strides = [1, 1]} : vector<16x192xf32> to vector<16x32xf32>
    %cst_15 = arith.constant dense<0.000000e+00> : vector<16x16xf32>
    %20 = tpu.matmul %17, %18, %cst_15 {dimension_numbers = #tpu.dot_dimension_numbers<[1], [1], [0], [0], [0, 0, 1, 0], [], []>} : vector<16x8xf32>, vector<16x8xf32>, vector<16x16xf32> -> vector<16x16xf32>
    %21 = arith.addf %20, %12 : vector<16x16xf32>
    %cst_16 = arith.constant dense<0xFF800000> : vector<16xf32>
    %22 = vector.multi_reduction <maximumf>, %21, %cst_16 [1] : vector<16x16xf32> to vector<16xf32>
    %23 = vector.shape_cast %22 : vector<16xf32> to vector<16x1xf32>
    %24 = vector.broadcast %23 : vector<16x1xf32> to vector<16x16xf32>
    %25 = arith.subf %21, %24 : vector<16x16xf32>
    %26 = math.exp %25 : vector<16x16xf32>
    %cst_17 = arith.constant dense<0.000000e+00> : vector<16xf32>
    %27 = vector.multi_reduction <add>, %26, %cst_17 [1] : vector<16x16xf32> to vector<16xf32>
    %28 = vector.shape_cast %27 : vector<16xf32> to vector<16x1xf32>
    %29 = tpu.reciprocal %28 : vector<16x1xf32> -> vector<16x1xf32>
    %30 = vector.broadcast %29 : vector<16x1xf32> to vector<16x16xf32>
    %31 = arith.mulf %26, %30 : vector<16x16xf32>
    %cst_18 = arith.constant dense<0.000000e+00> : vector<16x32xf32>
    %32 = tpu.matmul %31, %19, %cst_18 {dimension_numbers = #tpu.dot_dimension_numbers<[1], [0], [0], [1], [0, 0, 1, 1], [], []>} : vector<16x16xf32>, vector<16x32xf32>, vector<16x32xf32> -> vector<16x32xf32>
    %33 = arith.addf %16, %32 : vector<16x32xf32>
    %34 = vector.extract_strided_slice %15 {offsets = [0, 8], sizes = [16, 8], strides = [1, 1]} : vector<16x192xf32> to vector<16x8xf32>
    %35 = vector.extract_strided_slice %15 {offsets = [0, 40], sizes = [16, 8], strides = [1, 1]} : vector<16x192xf32> to vector<16x8xf32>
    %36 = vector.extract_strided_slice %15 {offsets = [0, 96], sizes = [16, 32], strides = [1, 1]} : vector<16x192xf32> to vector<16x32xf32>
    %cst_19 = arith.constant dense<0.000000e+00> : vector<16x16xf32>
    %37 = tpu.matmul %34, %35, %cst_19 {dimension_numbers = #tpu.dot_dimension_numbers<[1], [1], [0], [0], [0, 0, 1, 0], [], []>} : vector<16x8xf32>, vector<16x8xf32>, vector<16x16xf32> -> vector<16x16xf32>
    %38 = arith.addf %37, %12 : vector<16x16xf32>
    %cst_20 = arith.constant dense<0xFF800000> : vector<16xf32>
    %39 = vector.multi_reduction <maximumf>, %38, %cst_20 [1] : vector<16x16xf32> to vector<16xf32>
    %40 = vector.shape_cast %39 : vector<16xf32> to vector<16x1xf32>
    %41 = vector.broadcast %40 : vector<16x1xf32> to vector<16x16xf32>
    %42 = arith.subf %38, %41 : vector<16x16xf32>
    %43 = math.exp %42 : vector<16x16xf32>
    %cst_21 = arith.constant dense<0.000000e+00> : vector<16xf32>
    %44 = vector.multi_reduction <add>, %43, %cst_21 [1] : vector<16x16xf32> to vector<16xf32>
    %45 = vector.shape_cast %44 : vector<16xf32> to vector<16x1xf32>
    %46 = tpu.reciprocal %45 : vector<16x1xf32> -> vector<16x1xf32>
    %47 = vector.broadcast %46 : vector<16x1xf32> to vector<16x16xf32>
    %48 = arith.mulf %43, %47 : vector<16x16xf32>
    %cst_22 = arith.constant dense<0.000000e+00> : vector<16x32xf32>
    %49 = tpu.matmul %48, %36, %cst_22 {dimension_numbers = #tpu.dot_dimension_numbers<[1], [0], [0], [1], [0, 0, 1, 1], [], []>} : vector<16x16xf32>, vector<16x32xf32>, vector<16x32xf32> -> vector<16x32xf32>
    %50 = arith.addf %33, %49 : vector<16x32xf32>
    %51 = vector.extract_strided_slice %15 {offsets = [0, 16], sizes = [16, 8], strides = [1, 1]} : vector<16x192xf32> to vector<16x8xf32>
    %52 = vector.extract_strided_slice %15 {offsets = [0, 48], sizes = [16, 8], strides = [1, 1]} : vector<16x192xf32> to vector<16x8xf32>
    %53 = vector.extract_strided_slice %15 {offsets = [0, 128], sizes = [16, 32], strides = [1, 1]} : vector<16x192xf32> to vector<16x32xf32>
    %cst_23 = arith.constant dense<0.000000e+00> : vector<16x16xf32>
    %54 = tpu.matmul %51, %52, %cst_23 {dimension_numbers = #tpu.dot_dimension_numbers<[1], [1], [0], [0], [0, 0, 1, 0], [], []>} : vector<16x8xf32>, vector<16x8xf32>, vector<16x16xf32> -> vector<16x16xf32>
    %55 = arith.addf %54, %12 : vector<16x16xf32>
    %cst_24 = arith.constant dense<0xFF800000> : vector<16xf32>
    %56 = vector.multi_reduction <maximumf>, %55, %cst_24 [1] : vector<16x16xf32> to vector<16xf32>
    %57 = vector.shape_cast %56 : vector<16xf32> to vector<16x1xf32>
    %58 = vector.broadcast %57 : vector<16x1xf32> to vector<16x16xf32>
    %59 = arith.subf %55, %58 : vector<16x16xf32>
    %60 = math.exp %59 : vector<16x16xf32>
    %cst_25 = arith.constant dense<0.000000e+00> : vector<16xf32>
    %61 = vector.multi_reduction <add>, %60, %cst_25 [1] : vector<16x16xf32> to vector<16xf32>
    %62 = vector.shape_cast %61 : vector<16xf32> to vector<16x1xf32>
    %63 = tpu.reciprocal %62 : vector<16x1xf32> -> vector<16x1xf32>
    %64 = vector.broadcast %63 : vector<16x1xf32> to vector<16x16xf32>
    %65 = arith.mulf %60, %64 : vector<16x16xf32>
    %cst_26 = arith.constant dense<0.000000e+00> : vector<16x32xf32>
    %66 = tpu.matmul %65, %53, %cst_26 {dimension_numbers = #tpu.dot_dimension_numbers<[1], [0], [0], [1], [0, 0, 1, 1], [], []>} : vector<16x16xf32>, vector<16x32xf32>, vector<16x32xf32> -> vector<16x32xf32>
    %67 = arith.addf %50, %66 : vector<16x32xf32>
    %68 = vector.extract_strided_slice %15 {offsets = [0, 24], sizes = [16, 8], strides = [1, 1]} : vector<16x192xf32> to vector<16x8xf32>
    %69 = vector.extract_strided_slice %15 {offsets = [0, 56], sizes = [16, 8], strides = [1, 1]} : vector<16x192xf32> to vector<16x8xf32>
    %70 = vector.extract_strided_slice %15 {offsets = [0, 160], sizes = [16, 32], strides = [1, 1]} : vector<16x192xf32> to vector<16x32xf32>
    %cst_27 = arith.constant dense<0.000000e+00> : vector<16x16xf32>
    %71 = tpu.matmul %68, %69, %cst_27 {dimension_numbers = #tpu.dot_dimension_numbers<[1], [1], [0], [0], [0, 0, 1, 0], [], []>} : vector<16x8xf32>, vector<16x8xf32>, vector<16x16xf32> -> vector<16x16xf32>
    %72 = arith.addf %71, %12 : vector<16x16xf32>
    %cst_28 = arith.constant dense<0xFF800000> : vector<16xf32>
    %73 = vector.multi_reduction <maximumf>, %72, %cst_28 [1] : vector<16x16xf32> to vector<16xf32>
    %74 = vector.shape_cast %73 : vector<16xf32> to vector<16x1xf32>
    %75 = vector.broadcast %74 : vector<16x1xf32> to vector<16x16xf32>
    %76 = arith.subf %72, %75 : vector<16x16xf32>
    %77 = math.exp %76 : vector<16x16xf32>
    %cst_29 = arith.constant dense<0.000000e+00> : vector<16xf32>
    %78 = vector.multi_reduction <add>, %77, %cst_29 [1] : vector<16x16xf32> to vector<16xf32>
    %79 = vector.shape_cast %78 : vector<16xf32> to vector<16x1xf32>
    %80 = tpu.reciprocal %79 : vector<16x1xf32> -> vector<16x1xf32>
    %81 = vector.broadcast %80 : vector<16x1xf32> to vector<16x16xf32>
    %82 = arith.mulf %77, %81 : vector<16x16xf32>
    %cst_30 = arith.constant dense<0.000000e+00> : vector<16x32xf32>
    %83 = tpu.matmul %82, %70, %cst_30 {dimension_numbers = #tpu.dot_dimension_numbers<[1], [0], [0], [1], [0, 0, 1, 1], [], []>} : vector<16x16xf32>, vector<16x32xf32>, vector<16x32xf32> -> vector<16x32xf32>
    %84 = arith.addf %67, %83 : vector<16x32xf32>
    %85 = vector.broadcast %5 : vector<1x32xf32> to vector<16x32xf32>
    %86 = arith.addf %84, %85 : vector<16x32xf32>
    %87 = arith.addf %0, %86 : vector<16x32xf32>
    %cst_31 = arith.constant dense<0.000000e+00> : vector<16xf32>
    %88 = vector.multi_reduction <add>, %87, %cst_31 [1] : vector<16x32xf32> to vector<16xf32>
    %89 = vector.shape_cast %88 : vector<16xf32> to vector<16x1xf32>
    %cst_32 = arith.constant 3.200000e+01 : f32
    %90 = vector.broadcast %cst_32 : f32 to vector<16x1xf32>
    %91 = arith.divf %89, %90 : vector<16x1xf32>
    %92 = arith.mulf %87, %87 : vector<16x32xf32>
    %cst_33 = arith.constant dense<0.000000e+00> : vector<16xf32>
    %93 = vector.multi_reduction <add>, %92, %cst_33 [1] : vector<16x32xf32> to vector<16xf32>
    %94 = vector.shape_cast %93 : vector<16xf32> to vector<16x1xf32>
    %cst_34 = arith.constant 3.200000e+01 : f32
    %95 = vector.broadcast %cst_34 : f32 to vector<16x1xf32>
    %96 = arith.divf %94, %95 : vector<16x1xf32>
    %97 = arith.mulf %91, %91 : vector<16x1xf32>
    %98 = arith.subf %96, %97 : vector<16x1xf32>
    %99 = vector.broadcast %91 : vector<16x1xf32> to vector<16x32xf32>
    %100 = arith.subf %87, %99 : vector<16x32xf32>
    %cst_35 = arith.constant 9.99999974E-6 : f32
    %101 = vector.broadcast %cst_35 : f32 to vector<16x1xf32>
    %102 = arith.addf %98, %101 : vector<16x1xf32>
    %103 = math.rsqrt %102 : vector<16x1xf32>
    %104 = vector.broadcast %103 : vector<16x1xf32> to vector<16x32xf32>
    %105 = arith.mulf %100, %104 : vector<16x32xf32>
    %106 = vector.broadcast %8 : vector<1x32xf32> to vector<16x32xf32>
    %107 = arith.mulf %105, %106 : vector<16x32xf32>
    %108 = vector.broadcast %9 : vector<1x32xf32> to vector<16x32xf32>
    %109 = arith.addf %107, %108 : vector<16x32xf32>
    %cst_36 = arith.constant dense<0.000000e+00> : vector<16x64xf32>
    %110 = tpu.matmul %109, %2, %cst_36 {dimension_numbers = #tpu.dot_dimension_numbers<[1], [0], [0], [1], [0, 0, 1, 1], [], []>} : vector<16x32xf32>, vector<32x64xf32>, vector<16x64xf32> -> vector<16x64xf32>
    %111 = vector.broadcast %6 : vector<1x64xf32> to vector<16x64xf32>
    %112 = arith.addf %110, %111 : vector<16x64xf32>
    %cst_37 = arith.constant 0.000000e+00 : f32
    %113 = vector.broadcast %cst_37 : f32 to vector<16x64xf32>
    %114 = arith.maximumf %112, %113 : vector<16x64xf32>
    %cst_38 = arith.constant dense<0.000000e+00> : vector<16x32xf32>
    %115 = tpu.matmul %114, %3, %cst_38 {dimension_numbers = #tpu.dot_dimension_numbers<[1], [0], [0], [1], [0, 0, 1, 1], [], []>} : vector<16x64xf32>, vector<64x32xf32>, vector<16x32xf32> -> vector<16x32xf32>
    %116 = vector.broadcast %7 : vector<1x32xf32> to vector<16x32xf32>
    %117 = arith.addf %115, %116 : vector<16x32xf32>
    %118 = arith.addf %109, %117 : vector<16x32xf32>
    %cst_39 = arith.constant dense<0.000000e+00> : vector<16xf32>
    %119 = vector.multi_reduction <add>, %118, %cst_39 [1] : vector<16x32xf32> to vector<16xf32>
    %120 = vector.shape_cast %119 : vector<16xf32> to vector<16x1xf32>
    %cst_40 = arith.constant 3.200000e+01 : f32
    %121 = vector.broadcast %cst_40 : f32 to vector<16x1xf32>
    %122 = arith.divf %120, %121 : vector<16x1xf32>
    %123 = arith.mulf %118, %118 : vector<16x32xf32>
    %cst_41 = arith.constant dense<0.000000e+00> : vector<16xf32>
    %124 = vector.multi_reduction <add>, %123, %cst_41 [1] : vector<16x32xf32> to vector<16xf32>
    %125 = vector.shape_cast %124 : vector<16xf32> to vector<16x1xf32>
    %cst_42 = arith.constant 3.200000e+01 : f32
    %126 = vector.broadcast %cst_42 : f32 to vector<16x1xf32>
    %127 = arith.divf %125, %126 : vector<16x1xf32>
    %128 = arith.mulf %122, %122 : vector<16x1xf32>
    %129 = arith.subf %127, %128 : vector<16x1xf32>
    %130 = vector.broadcast %122 : vector<16x1xf32> to vector<16x32xf32>
    %131 = arith.subf %118, %130 : vector<16x32xf32>
    %cst_43 = arith.constant 9.99999974E-6 : f32
    %132 = vector.broadcast %cst_43 : f32 to vector<16x1xf32>
    %133 = arith.addf %129, %132 : vector<16x1xf32>
    %134 = math.rsqrt %133 : vector<16x1xf32>
    %135 = vector.broadcast %134 : vector<16x1xf32> to vector<16x32xf32>
    %136 = arith.mulf %131, %135 : vector<16x32xf32>
    %137 = vector.broadcast %10 : vector<1x32xf32> to vector<16x32xf32>
    %138 = arith.mulf %136, %137 : vector<16x32xf32>
    %139 = vector.broadcast %11 : vector<1x32xf32> to vector<16x32xf32>
    %140 = arith.addf %138, %139 : vector<16x32xf32>
    %c0_44 = arith.constant 0 : index
    %c0_45 = arith.constant 0 : index
    %141 = vector.load %arg2[%c0_44, %c0_45] : memref<16x32xf32, #tpu.memory_space<vmem>>, vector<16x32xf32>
    tpu.vector_store %arg2[%c0_44, %c0_45], %140 {strides = array<i32>} : memref<16x32xf32, #tpu.memory_space<vmem>>, vector<16x32xf32>,
    return
  }
}

</mosaic_0001>

<bundles_post_ra>
// kernel: transformer_encoder_layer.1
= control target key start
LH: loop header
LB: loop body
LE: loop exit
PB: predicated region body
PF: predicated region fallthrough
CT: control target
= control target key end

     0   :  { %7 = vsyncpa [#allocation3], 0  ;;  %s1268_s0 = inlined_call_operand.hbm [shape: f32[16,32], index: 0, kind: input, shape index: {}]   ;;  %s1269_s1 = inlined_call_operand.hbm [shape: f32[152,192], index: 1, kind: input, shape index: {}]   ;;  %s1270_s2 = inlined_call_operand.hbm [shape: f32[16,32], index: 2, kind: output, shape index: {}]  }
   0x1   :  { %8 = vsyncpa [#allocation6], 0 }
   0x2   :  { %9 = vsyncpa [#allocation4], 0  ;;  %s14_s11 = sshll.u32 %s1268_s0, 4  ;;  %s1007_s12 = smov [#allocation2]   ;;  %s15_s11 = int_to_ptr.hbm [resolvable:$true] %s14_s11 }
   0x3   :  { %s16_s13 = sshll.u32 %s1007_s12, 4  ;;  %s27_s16 = sshll.u32 %s1269_s1, 4  ;;  %s17_s13 = int_to_ptr.vmem [resolvable:$true] %s16_s13  ;;  %s28_s16 = int_to_ptr.hbm [resolvable:$true] %s27_s16 }
   0x4   :  { %s1008_s17 = smov 128   ;;  %s1009_s18 = smov 8  }
   0x5   :  { %22 = dma.hbm_to_vmem [thread:$0]  %s15_s11, 256, %s17_s13, [#allocation3], %s1008_s17, %s1008_s17, %s1009_s18  }
   0x6   :  { %s1010_s19 = smov [#allocation5]   ;;  %s1011_s21 = smov 256  }
   0x7   :  { %s29_s20 = sshll.u32 %s1010_s19, 4  ;;  %s1012_s0 = smov 16   ;;  %s30_s20 = int_to_ptr.vmem [resolvable:$true] %s29_s20 }
   0x8   :  { %35 = dma.hbm_to_vmem [thread:$0]  %s28_s16, 4864, %s30_s20, [#allocation6], %s1011_s21, %s1011_s21, %s1012_s0  }
   0x9   :  { %1001 = dma.done.wait [#allocation3], 256  }
   0xa   :  { %1002 = vsyncadd [#allocation3], 4294967040 }
   0xb   :  { %1003 = dma.done.wait [#allocation6], 4864  }
   0xc   :  { %1004 = vsyncadd [#allocation6], 4294962432  ;;  %v52_v0 = vld [vmem:[#allocation5 + $0x30] sm:$0xff]  ;;  %v50_v1 = vld [vmem:[#allocation5 + $0x20] sm:$0xff]  ;;  %vm82_vm0 = vcmask 261120   ;;  %s1013_s1 = smov 96  }
   0xd   :  { %101 = vmatpush.msra.mxu0 %v52_v0  ;;  %v48_v2 = vld [vmem:[#allocation5 + $0x10] sm:$0xff]  ;;  %v46_v3 = vld [vmem:[#allocation5] sm:$0xff]  ;;  %v1052_v5 = vld [vmem:[#allocation2 + $0x8] sm:$0xff]  ;;  %s1014_s22 = smov 120   ;;  %s1015_s23 = smov 88   ;;  %vm141_vm1 = vcmask 64512  }
   0xe   :  { %v1048_v4 = vld [vmem:[#allocation2] sm:$0xff]  ;;  %v1056_v6 = vld [vmem:[#allocation5 + $0x100] ss:$8 sm:$0x3]  ;;  %vm173_vm2 = vcmask 130048   ;;  %s1016_s24 = smov 80  }
   0xf   :  { %102 = vmatpush.msra.mxu0 %v50_v1  ;;  %v78_v7 = vperm.slane %v1056_v6, 0  ;;  %v1081_v18 = vld [vmem:[#allocation5 + $0x110] sm:$0xff]  ;;  %v1085_v22 = vld [vmem:[#allocation5 + $0x120] sm:$0xff]  ;;  %s1017_s25 = smov 32   ;;  %s1018_s26 = smov 72  }
  0x10   :  { %s1019_s27 = smov 104   ;;  %s1020_s28 = smov 112  }
  0x11   :  { %103 = vmatpush.msra.mxu0 %v48_v2  ;;  %s1021_s29 = smov 64   ;;  %s1023_s30 = smov [#allocation7]  }
  0x12   :  { %s807_s3 = sshll.u32 %s1023_s30, 4  ;;  %s809_s6 = sshll.u32 %s1270_s2, 4  ;;  %s808_s3 = int_to_ptr.vmem [resolvable:$true] %s807_s3  ;;  %s810_s6 = int_to_ptr.hbm [resolvable:$true] %s809_s6 }
  0x13   :  { %104 = vmatpush.msra.mxu0 %v46_v3 }
  0x14   :  { %823 = vmatmul.msk.f32.vlgmr.msra.gmra.mxu0 %vm82_vm0, %v1048_v4 }
  0x1c   :  { %824 = vmatmul.msk.f32.gmra.mxu0 %vm82_vm0, %v1052_v5 }
  0x91   :  { %v106_v8 = vpop.f32.mrf.mxu0 }
  0x92   :  { %v1059_v9 = vadd.f32 %v106_v8, %v78_v7 }
  0x94   :  { %137 = vrot.lane.b32.xlu2 %v1059_v9, %s1013_s1  ;;  %222 = vrot.lane.b32.xlu1 %v1059_v9, %s1014_s22 }
  0x99   :  { %v109_v10 = vpop.f32.mrf.mxu0 }
  0x9a   :  { %v1064_v11 = vadd.f32 %v109_v10, %v78_v7 }
  0x9c   :  { %228 = vrot.lane.b32.xlu0 %v1064_v11, %s1015_s23  ;;  %224 = vrot.lane.b32.xlu1 %v1064_v11, %s1014_s22  ;;  %v1092_v26 = vpack.i.bf16 %v1059_v9, %v1064_v11 }
  0xa4   :  { %226 = vrot.lane.b32.xlu0 %v1059_v9, %s1015_s23 }
  0xac   :  { %139 = vrot.lane.b32.xlu0 %v1064_v11, %s1013_s1 }
  0xee   :  { %v138_v17 = vpop.permute.xlu2 %137 }
 0x106   :  { %v223_v14 = vpop.permute.xlu1 %222 }
 0x10e   :  { %v229_v12 = vpop.permute.xlu0 %228  ;;  %v225_v16 = vpop.permute.xlu1 %224 }
 0x10f   :  { %831 = vmatpush.xpose.msk.msra.mxu3 %vm141_vm1, %v229_v12 }
 0x116   :  { %v227_v13 = vpop.permute.xlu0 %226 }
 0x117   :  { %832 = vmatpush.xpose.msk.msra.mxu3 %vm141_vm1, %v227_v13 }
 0x11a   :  { %833 = vmatmul.msk.f32.vlgmr.msra.gmra.mxu3 %vm141_vm1, %v223_v14 }
 0x11e   :  { %v140_v15 = vpop.permute.xlu0 %139 }
 0x11f   :  { %827 = vmatpush.xpose.msk.msra.mxu2 %vm141_vm1, %v140_v15 }
 0x122   :  { %834 = vmatmul.msk.f32.gmra.mxu3 %vm141_vm1, %v225_v16 }
 0x123   :  { %828 = vmatpush.xpose.msk.msra.mxu2 %vm141_vm1, %v138_v17  ;;  %v53_v17 = vld [vmem:[#allocation5 + $0x38] sm:$0xff] }
 0x124   :  { %124 = vmatpush.msra.mxu1 %v53_v17 }
 0x126   :  { %829 = vmatmul.msk.f32.vlgmr.msra.gmra.mxu2 %vm141_vm1, %v1059_v9 }
 0x12e   :  { %830 = vmatmul.msk.f32.gmra.mxu2 %vm141_vm1, %v1064_v11 }
 0x19d   :  { %v255_v19 = vpop.f32.mrf.mxu3 }
 0x19e   :  { %v256_v20 = vadd.f32 %v255_v19, %v1081_v18  ;;  %v51_v19 = vld [vmem:[#allocation5 + $0x28] sm:$0xff] }
 0x19f   :  { %125 = vmatpush.msra.mxu1 %v51_v19 }
 0x1a0   :  { %v261_v21 = vsel %vm173_vm2, %v256_v20, -inf }
 0x1a1   :  { %262 = vmax.xlane.f32.xlu2 %v261_v21  ;;  %v49_v21 = vld [vmem:[#allocation5 + $0x18] sm:$0xff] }
 0x1a2   :  { %126 = vmatpush.msra.mxu1 %v49_v21 }
 0x1a5   :  { %v258_v23 = vpop.f32.mrf.mxu3 }
 0x1a6   :  { %v259_v24 = vadd.f32 %v258_v23, %v1085_v22  ;;  %v47_v23 = vld [vmem:[#allocation5 + $0x8] sm:$0xff] }
 0x1a7   :  { %127 = vmatpush.msra.mxu1 %v47_v23 }
 0x1a8   :  { %v264_v25 = vsel %vm173_vm2, %v259_v24, -inf  ;;  %825 = vmatmul.msk.f32.vlgmr.msra.gmra.mxu1 %vm82_vm0, %v1048_v4 }
 0x1a9   :  { %265 = vmax.xlane.f32.xlu2 %v264_v25  ;;  %v167_v27 = vpop.f32.mrf.mxu2 }
 0x1aa   :  { %v1116_v48 = vadd.f32 %v167_v27, %v1081_v18 }
 0x1ac   :  { %v174_v49 = vsel %vm173_vm2, %v1116_v48, -inf }
 0x1b0   :  { %826 = vmatmul.msk.f32.gmra.mxu1 %vm82_vm0, %v1052_v5 }
 0x1b1   :  { %v170_v28 = vpop.f32.mrf.mxu2 }
 0x1b2   :  { %v1101_v29 = vadd.f32 %v170_v28, %v1085_v22 }
 0x1b4   :  { %v177_v30 = vsel %vm173_vm2, %v1101_v29, -inf }
 0x1c1   :  { %385 = vrot.lane.b32.xlu2 %v1064_v11, %s1016_s24 }
 0x1c9   :  { %873 = vrot.lane.b32.xlu2 %v1092_v26, %s1017_s25 }
 0x1d1   :  { %383 = vrot.lane.b32.xlu2 %v1059_v9, %s1016_s24 }
 0x1d9   :  { %503 = vrot.lane.b32.xlu2 %v1064_v11, %s1018_s26 }
 0x1e1   :  { %501 = vrot.lane.b32.xlu2 %v1059_v9, %s1018_s26 }
 0x1e9   :  { %497 = vrot.lane.b32.xlu2 %v1059_v9, %s1019_s27 }
 0x212   :  { %178 = vmax.xlane.f32.xlu2 %v177_v30 }
 0x214   :  { %v263_v31 = vpop.xlane.xlu2 %262 }
 0x215   :  { %v267_v32 = vsub.f32 %v256_v20, %v263_v31 }
 0x217   :  { %v269_v33 = vmul.f32 1.442695, %v267_v32 }
 0x219   :  { %887 = vpow2.f32 %v269_v33 }
 0x21c   :  { %v266_v34 = vpop.xlane.xlu2 %265 }
 0x21d   :  { %v268_v35 = vsub.f32 %v259_v24, %v266_v34 }
 0x21f   :  { %v888_v36 = vpop.eup %887  ;;  %v271_v37 = vmul.f32 1.442695, %v268_v35 }
 0x220   :  { %v273_v38 = vsel %vm173_vm2, %v888_v36, 0.0 }
 0x221   :  { %889 = vpow2.f32 %v271_v37  ;;  %274 = vadd.xlane.f32.xlu1 %v273_v38 }
 0x224   :  { %v386_v39 = vpop.permute.xlu2 %385 }
 0x225   :  { %839 = vmatpush.xpose.msk.msrb.mxu2 %vm141_vm1, %v386_v39 }
 0x227   :  { %v890_v40 = vpop.eup %889 }
 0x228   :  { %v276_v41 = vsel %vm173_vm2, %v890_v40, 0.0 }
 0x229   :  { %277 = vadd.xlane.f32.xlu0 %v276_v41 }
 0x22c   :  { %v874_v42 = vpop.permute.xlu2 %873 }
 0x22d   :  { %v875_v43 = vunpack.i.l.bf16 %v874_v42  ;;  %v876_v44 = vunpack.i.h.bf16 %v874_v42 }
 0x22f   :  { %335 = vmatpush.msrb.mxu0 %v875_v43 }
 0x231   :  { %336 = vmatpush.msrb.mxu0 %v876_v44 }
 0x234   :  { %v384_v45 = vpop.permute.xlu2 %383 }
 0x235   :  { %840 = vmatpush.xpose.msk.msrb.mxu2 %vm141_vm1, %v384_v45 }
 0x23a   :  { %379 = vrot.lane.b32.xlu1 %v1059_v9, %s1020_s28 }
 0x23c   :  { %v504_v46 = vpop.permute.xlu2 %503 }
 0x23d   :  { %381 = vrot.lane.b32.xlu0 %v1064_v11, %s1020_s28  ;;  %845 = vmatpush.xpose.msk.msra.mxu0 %vm141_vm1, %v504_v46 }
 0x242   :  { %499 = vrot.lane.b32.xlu1 %v1064_v11, %s1019_s27 }
 0x244   :  { %v502_v47 = vpop.permute.xlu2 %501 }
 0x245   :  { %846 = vmatpush.xpose.msk.msra.mxu0 %vm141_vm1, %v502_v47 }
 0x24c   :  { %v498_v15 = vpop.permute.xlu2 %497 }
 0x267   :  { %175 = vmax.xlane.f32.xlu0 %v174_v49 }
 0x285   :  { %v179_v24 = vpop.xlane.xlu2 %178 }
 0x286   :  { %v181_v27 = vsub.f32 %v1101_v29, %v179_v24 }
 0x288   :  { %v184_v33 = vmul.f32 1.442695, %v181_v27 }
 0x294   :  { %v275_v50 = vpop.xlane.xlu1 %274 }
 0x295   :  { %891 = vrcp.f32 %v275_v50  ;;  %v290_v55 = vand.u32 2147483648, %v275_v50  ;;  %v288_v57 = vand.u32 2147483647, %v275_v50  ;;  %vm284_vm4 = vweird.f32 %v275_v50 }
 0x297   :  { %v291_v60 = vor.u32 1.1754944e-38, %v290_v55  ;;  %vm289_vm6 = vcmp.eq.f32.partialorder %v288_v57, 8.507059e+37  ;;  %v79_v57 = vperm.slane %v1056_v6, 1 }
 0x29b   :  { %v892_v51 = vpop.eup %891 }
 0x29c   :  { %v280_v52 = vmul.f32 %v892_v51, %v275_v50  ;;  %v278_v53 = vpop.xlane.xlu0 %277  ;;  %vm285_vm3 = vweird.f32 %v892_v51 }
 0x29d   :  { %893 = vrcp.f32 %v278_v53  ;;  %vm286_vm5 = vmor %vm284_vm4, %vm285_vm3  ;;  %v304_v2 = vand.u32 2147483648, %v278_v53  ;;  %v302_v7 = vand.u32 2147483647, %v278_v53  ;;  %vm298_vm8 = vweird.f32 %v278_v53 }
 0x29e   :  { %v281_v54 = vsub.f32 1.0, %v280_v52  ;;  %895 = vpow2.f32 %v184_v33 }
 0x29f   :  { %v305_v9 = vor.u32 1.1754944e-38, %v304_v2  ;;  %vm303_vm10 = vcmp.eq.f32.partialorder %v302_v7, 8.507059e+37 }
 0x2a0   :  { %v282_v56 = vmul.f32 %v892_v51, %v281_v54 }
 0x2a2   :  { %v283_v58 = vadd.f32 %v892_v51, %v282_v56 }
 0x2a3   :  { %v894_v59 = vpop.eup %893 }
 0x2a4   :  { %v294_v61 = vmul.f32 %v894_v59, %v278_v53  ;;  %v287_v62 = vsel %vm286_vm5, %v892_v51, %v283_v58  ;;  %vm299_vm7 = vweird.f32 %v894_v59  ;;  %v1142_v41 = vpop.eup %895 }
 0x2a5   :  { %v292_v63 = vsel %vm289_vm6, %v291_v60, %v287_v62  ;;  %vm300_vm9 = vmor %vm298_vm8, %vm299_vm7  ;;  %v189_v45 = vsel %vm173_vm2, %v1142_v41, 0.0 }
 0x2a6   :  { %v295_v0 = vsub.f32 1.0, %v294_v61  ;;  %v307_v1 = vmul.f32 %v888_v36, %v292_v63 }
 0x2a8   :  { %v296_v3 = vmul.f32 %v894_v59, %v295_v0  ;;  %835 = vmatmul.msk.f32.vlgmr.msrb.gmra.mxu0 %vm173_vm2, %v307_v1 }
 0x2aa   :  { %v297_v8 = vadd.f32 %v894_v59, %v296_v3 }
 0x2ac   :  { %v380_v10 = vpop.permute.xlu1 %379  ;;  %v301_v11 = vsel %vm300_vm9, %v894_v59, %v297_v8 }
 0x2ad   :  { %841 = vmatmul.msk.f32.vlgmr.msrb.gmra.mxu2 %vm141_vm1, %v380_v10  ;;  %v306_v12 = vsel %vm303_vm10, %v305_v9, %v301_v11 }
 0x2ae   :  { %v308_v13 = vmul.f32 %v890_v40, %v306_v12 }
 0x2af   :  { %v382_v14 = vpop.permute.xlu0 %381 }
 0x2b0   :  { %836 = vmatmul.msk.f32.gmra.mxu0 %vm173_vm2, %v308_v13 }
 0x2b4   :  { %v500_v16 = vpop.permute.xlu1 %499 }
 0x2b5   :  { %842 = vmatmul.msk.f32.gmra.mxu2 %vm141_vm1, %v382_v14 }
 0x2b8   :  { %847 = vmatmul.msk.f32.vlgmr.msra.gmra.mxu0 %vm141_vm1, %v498_v15 }
 0x2c0   :  { %848 = vmatmul.msk.f32.gmra.mxu0 %vm141_vm1, %v500_v16 }
 0x2da   :  { %v176_v28 = vpop.xlane.xlu0 %175 }
 0x2db   :  { %v180_v32 = vsub.f32 %v1116_v48, %v176_v28 }
 0x2dd   :  { %v182_v36 = vmul.f32 1.442695, %v180_v32 }
 0x2df   :  { %897 = vpow2.f32 %v182_v36 }
 0x2e5   :  { %v1145_v44 = vpop.eup %897 }
 0x2e6   :  { %v186_v46 = vsel %vm173_vm2, %v1145_v44, 0.0 }
 0x325   :  { %v1126_v20 = vpop.f32.mrf.mxu0 }
 0x32d   :  { %v1130_v25 = vpop.f32.mrf.mxu0 }
 0x330   :  { %v412_v30 = vpop.f32.mrf.mxu2 }
 0x331   :  { %v413_v31 = vadd.f32 %v412_v30, %v1081_v18 }
 0x333   :  { %v418_v34 = vsel %vm173_vm2, %v413_v31, -inf }
 0x334   :  { %419 = vmax.xlane.f32.xlu1 %v418_v34 }
 0x335   :  { %v530_v35 = vpop.f32.mrf.mxu0 }
 0x336   :  { %v531_v37 = vadd.f32 %v530_v35, %v1081_v18 }
 0x338   :  { %v415_v38 = vpop.f32.mrf.mxu2  ;;  %v536_v29 = vsel %vm173_vm2, %v531_v37, -inf }
 0x339   :  { %v416_v39 = vadd.f32 %v415_v38, %v1085_v22  ;;  %537 = vmax.xlane.f32.xlu2 %v536_v29 }
 0x33b   :  { %v421_v40 = vsel %vm173_vm2, %v416_v39, -inf }
 0x33c   :  { %422 = vmax.xlane.f32.xlu0 %v421_v40 }
 0x33d   :  { %v533_v42 = vpop.f32.mrf.mxu0 }
 0x33e   :  { %v534_v43 = vadd.f32 %v533_v42, %v1085_v22  ;;  %v129_v22 = vpop.f32.mrf.mxu1 }
 0x33f   :  { %v130_v1 = vadd.f32 %v129_v22, %v79_v57 }
 0x340   :  { %v539_v18 = vsel %vm173_vm2, %v534_v43, -inf }
 0x341   :  { %540 = vmax.xlane.f32.xlu1 %v539_v18  ;;  %190 = vadd.xlane.f32.xlu2 %v189_v45 }
 0x344   :  { %187 = vadd.xlane.f32.xlu0 %v186_v46 }
 0x346   :  { %v132_v61 = vpop.f32.mrf.mxu1 }
 0x347   :  { %v133_v62 = vadd.f32 %v132_v61, %v79_v57 }
 0x349   :  { %486 = vmatpush.msrb.mxu3 %v133_v62  ;;  %v882_v9 = vpack.i.bf16 %v130_v1, %v133_v62 }
 0x34b   :  { %487 = vmatpush.msrb.mxu3 %v130_v1 }
 0x3a7   :  { %v420_v47 = vpop.xlane.xlu1 %419 }
 0x3a8   :  { %v424_v48 = vsub.f32 %v413_v31, %v420_v47 }
 0x3aa   :  { %v426_v49 = vmul.f32 1.442695, %v424_v48 }
 0x3ac   :  { %899 = vpow2.f32 %v426_v49  ;;  %v538_v50 = vpop.xlane.xlu2 %537 }
 0x3ad   :  { %v542_v51 = vsub.f32 %v531_v37, %v538_v50 }
 0x3af   :  { %v544_v52 = vmul.f32 1.442695, %v542_v51  ;;  %v423_v53 = vpop.xlane.xlu0 %422 }
 0x3b0   :  { %v425_v54 = vsub.f32 %v416_v39, %v423_v53 }
 0x3b1   :  { %901 = vpow2.f32 %v544_v52 }
 0x3b2   :  { %v1152_v55 = vpop.eup %899  ;;  %v428_v56 = vmul.f32 1.442695, %v425_v54 }
 0x3b3   :  { %v430_v58 = vsel %vm173_vm2, %v1152_v55, 0.0 }
 0x3b4   :  { %903 = vpow2.f32 %v428_v56  ;;  %431 = vadd.xlane.f32.xlu1 %v430_v58  ;;  %v541_v59 = vpop.xlane.xlu1 %540  ;;  %v1171_v12 = vpop.xlane.xlu2 %190 }
 0x3b5   :  { %v543_v60 = vsub.f32 %v534_v43, %v541_v59  ;;  %vm211_vm10 = vweird.f32 %v1171_v12 }
 0x3b7   :  { %v1157_v63 = vpop.eup %901  ;;  %v546_v0 = vmul.f32 1.442695, %v543_v60  ;;  %v188_v10 = vpop.xlane.xlu0 %187 }
 0x3b8   :  { %v548_v2 = vsel %vm173_vm2, %v1157_v63, 0.0  ;;  %vm197_vm1 = vweird.f32 %v188_v10  ;;  %v203_v18 = vand.u32 2147483648, %v188_v10  ;;  %v201_v46 = vand.u32 2147483647, %v188_v10 }
 0x3b9   :  { %905 = vpow2.f32 %v546_v0  ;;  %549 = vadd.xlane.f32.xlu2 %v548_v2  ;;  %v217_v2 = vand.u32 2147483648, %v1171_v12 }
 0x3ba   :  { %v1161_v3 = vpop.eup %903  ;;  %907 = vrcp.f32 %v188_v10  ;;  %v204_v53 = vor.u32 1.1754944e-38, %v203_v18  ;;  %vm202_vm7 = vcmp.eq.f32.partialorder %v201_v46, 8.507059e+37 }
 0x3bb   :  { %v433_v6 = vsel %vm173_vm2, %v1161_v3, 0.0 }
 0x3bc   :  { %434 = vadd.xlane.f32.xlu0 %v433_v6 }
 0x3bf   :  { %v1165_v7 = vpop.eup %905 }
 0x3c0   :  { %v551_v8 = vsel %vm173_vm2, %v1165_v7, 0.0  ;;  %v908_v13 = vpop.eup %907 }
 0x3c1   :  { %v193_v14 = vmul.f32 %v908_v13, %v188_v10  ;;  %vm198_vm15 = vweird.f32 %v908_v13  ;;  %v215_v10 = vand.u32 2147483647, %v1171_v12 }
 0x3c2   :  { %vm1188_vm4 = vmor %vm197_vm1, %vm198_vm15 }
 0x3c4   :  { %552 = vadd.xlane.f32.xlu0 %v551_v8 }
 0x3cd   :  { %878 = vrot.lane.b32.xlu1 %v1092_v26, %s1021_s29  ;;  %v194_v26 = vsub.f32 1.0, %v193_v14 }
 0x3cf   :  { %v195_v31 = vmul.f32 %v908_v13, %v194_v26 }
 0x3d1   :  { %883 = vrot.lane.b32.xlu2 %v882_v9, %s1013_s1  ;;  %v196_v29 = vadd.f32 %v908_v13, %v195_v31 }
 0x3d3   :  { %v200_v52 = vsel %vm1188_vm4, %v908_v13, %v196_v29 }
 0x3d4   :  { %v205_v60 = vsel %vm202_vm7, %v204_v53, %v200_v52  ;;  %v1022_v53 = vmov 32.0  }
 0x3d5   :  { %v220_v9 = vmul.f32 %v1145_v44, %v205_v60 }
 0x427   :  { %v432_v11 = vpop.xlane.xlu1 %431 }
 0x428   :  { %909 = vrcp.f32 %v432_v11  ;;  %v447_v24 = vand.u32 2147483648, %v432_v11  ;;  %v445_v28 = vand.u32 2147483647, %v432_v11  ;;  %vm441_vm12 = vweird.f32 %v432_v11 }
 0x429   :  { %911 = vrcp.f32 %v1171_v12 }
 0x42a   :  { %v448_v34 = vor.u32 1.1754944e-38, %v447_v24  ;;  %vm446_vm14 = vcmp.eq.f32.partialorder %v445_v28, 8.507059e+37 }
 0x42c   :  { %v1176_v23 = vpop.xlane.xlu2 %549 }
 0x42d   :  { %v563_v26 = vand.u32 2147483647, %v1176_v23 }
 0x42e   :  { %v910_v15 = vpop.eup %909 }
 0x42f   :  { %v437_v16 = vmul.f32 %v910_v15, %v432_v11  ;;  %v435_v17 = vpop.xlane.xlu0 %434  ;;  %v1174_v19 = vpop.eup %911  ;;  %vm442_vm11 = vweird.f32 %v910_v15  ;;  %vm564_vm1 = vcmp.eq.f32.partialorder %v563_v26, 8.507059e+37  ;;  %v62_v26 = vld [vmem:[#allocation5 + $0xc0] sm:$0xff] }
 0x430   :  { %913 = vrcp.f32 %v435_v17  ;;  %v207_v30 = vmul.f32 %v1174_v19, %v1171_v12  ;;  %vm443_vm13 = vmor %vm441_vm12, %vm442_vm11  ;;  %v461_v45 = vand.u32 2147483648, %v435_v17  ;;  %v459_v48 = vand.u32 2147483647, %v435_v17 }
 0x431   :  { %v438_v21 = vsub.f32 1.0, %v437_v16  ;;  %915 = vrcp.f32 %v1176_v23  ;;  %vm455_vm5 = vweird.f32 %v435_v17  ;;  %vm212_vm9 = vweird.f32 %v1174_v19 }
 0x432   :  { %v208_v37 = vsub.f32 1.0, %v207_v30  ;;  %v462_v54 = vor.u32 1.1754944e-38, %v461_v45  ;;  %vm460_vm8 = vcmp.eq.f32.partialorder %v459_v48, 8.507059e+37  ;;  %vm213_vm11 = vmor %vm211_vm10, %vm212_vm9  ;;  %vm216_vm12 = vcmp.eq.f32.partialorder %v215_v10, 8.507059e+37 }
 0x433   :  { %v439_v27 = vmul.f32 %v910_v15, %v438_v21 }
 0x434   :  { %v209_v49 = vmul.f32 %v1174_v19, %v208_v37  ;;  %v884_v57 = vpop.permute.xlu2 %883 }
 0x435   :  { %v440_v32 = vadd.f32 %v910_v15, %v439_v27  ;;  %v885_v8 = vunpack.i.l.bf16 %v884_v57 }
 0x436   :  { %v914_v33 = vpop.eup %913  ;;  %v210_v0 = vadd.f32 %v1174_v19, %v209_v49 }
 0x437   :  { %v451_v35 = vmul.f32 %v914_v33, %v435_v17  ;;  %v444_v36 = vsel %vm443_vm13, %v910_v15, %v440_v32  ;;  %v1181_v40 = vpop.xlane.xlu0 %552  ;;  %v1184_v43 = vpop.eup %915  ;;  %vm456_vm3 = vweird.f32 %v914_v33  ;;  %v218_v15 = vor.u32 1.1754944e-38, %v217_v2 }
 0x438   :  { %v449_v38 = vsel %vm446_vm14, %v448_v34, %v444_v36  ;;  %917 = vrcp.f32 %v1181_v40  ;;  %v555_v51 = vmul.f32 %v1184_v43, %v1176_v23  ;;  %vm457_vm6 = vmor %vm455_vm5, %vm456_vm3  ;;  %v214_v14 = vsel %vm213_vm11, %v1174_v19, %v210_v0  ;;  %v55_v0 = vld [vmem:[#allocation5 + $0x50] sm:$0xff] }
 0x439   :  { %v452_v39 = vsub.f32 1.0, %v451_v35  ;;  %v464_v42 = vmul.f32 %v1152_v55, %v449_v38  ;;  %v219_v16 = vsel %vm216_vm12, %v218_v15, %v214_v14  ;;  %vm560_vm13 = vweird.f32 %v1184_v43  ;;  %v64_v14 = vld [vmem:[#allocation5 + $0xe0] sm:$0xff] }
 0x43a   :  { %v556_v61 = vsub.f32 1.0, %v555_v51  ;;  %v565_v17 = vand.u32 2147483648, %v1176_v23  ;;  %vm559_vm14 = vweird.f32 %v1176_v23  ;;  %v221_v21 = vmul.f32 %v1142_v41, %v219_v16 }
 0x43b   :  { %v453_v47 = vmul.f32 %v914_v33, %v452_v39  ;;  %843 = vmatmul.msk.f32.vlgmr.msrb.gmra.mxu3 %vm173_vm2, %v464_v42  ;;  %vm561_vm15 = vmor %vm559_vm14, %vm560_vm13  ;;  %v579_v31 = vand.u32 2147483648, %v1181_v40  ;;  %vm573_vm4 = vweird.f32 %v1181_v40  ;;  %v577_v23 = vand.u32 2147483647, %v1181_v40 }
 0x43c   :  { %v557_v11 = vmul.f32 %v1184_v43, %v556_v61  ;;  %v566_v27 = vor.u32 1.1754944e-38, %v565_v17  ;;  %919 = vrcp.f32 %v1022_v53  ;;  %v56_v61 = vld [vmem:[#allocation5 + $0x60] sm:$0xff]  ;;  %vm717_vm13 = vcmask 523264  }
 0x43d   :  { %v454_v22 = vadd.f32 %v914_v33, %v453_v47  ;;  %v70_v53 = vld [vmem:[#allocation5 + $0x103] ss:$0 sm:$0xff] }
 0x43e   :  { %v918_v1 = vpop.eup %917  ;;  %v558_v44 = vadd.f32 %v1184_v43, %v557_v11 }
 0x43f   :  { %v879_v55 = vpop.permute.xlu1 %878  ;;  %v458_v56 = vsel %vm457_vm6, %v914_v33, %v454_v22  ;;  %v569_v13 = vmul.f32 %v918_v1, %v1181_v40  ;;  %vm574_vm3 = vweird.f32 %v918_v1  ;;  %v580_v33 = vor.u32 1.1754944e-38, %v579_v31 }
 0x440   :  { %v880_v58 = vunpack.i.l.bf16 %v879_v55  ;;  %v463_v59 = vsel %vm460_vm8, %v462_v54, %v458_v56  ;;  %v881_v6 = vunpack.i.h.bf16 %v879_v55  ;;  %v562_v19 = vsel %vm561_vm15, %v1184_v43, %v558_v44  ;;  %vm575_vm5 = vmor %vm573_vm4, %vm574_vm3 }
 0x441   :  { %v465_v62 = vmul.f32 %v1161_v3, %v463_v59  ;;  %v886_v3 = vunpack.i.h.bf16 %v884_v57  ;;  %v570_v12 = vsub.f32 1.0, %v569_v13  ;;  %v567_v28 = vsel %vm564_vm1, %v566_v27, %v562_v19  ;;  %v57_v59 = vld [vmem:[#allocation5 + $0x70] sm:$0xff] }
 0x442   :  { %370 = vmatpush.msrb.mxu1 %v880_v58  ;;  %v582_v32 = vmul.f32 %v1157_v63, %v567_v28  ;;  %vm578_vm6 = vcmp.eq.f32.partialorder %v577_v23, 8.507059e+37  ;;  %v68_v63 = vld [vmem:[#allocation5 + $0x101] ss:$0 sm:$0xff]  ;;  %v920_v54 = vpop.eup %919  ;;  %704 = vmatpush.msra.mxu2 %v57_v59  ;;  %v65_v13 = vld [vmem:[#allocation5 + $0xf0] sm:$0xff] }
 0x443   :  { %844 = vmatmul.msk.f32.gmra.mxu3 %vm173_vm2, %v465_v62  ;;  %v571_v24 = vmul.f32 %v918_v1, %v570_v12  ;;  %v634_v55 = vmul.f32 32.0, %v920_v54  ;;  %v63_v12 = vld [vmem:[#allocation5 + $0xd0] sm:$0xff] }
 0x444   :  { %371 = vmatpush.msrb.mxu1 %v881_v6  ;;  %705 = vmatpush.msra.mxu2 %v56_v61 }
 0x445   :  { %837 = vmatmul.msk.f32.vlgmr.msrb.gmra.mxu1 %vm173_vm2, %v220_v9  ;;  %v572_v30 = vadd.f32 %v918_v1, %v571_v24  ;;  %v635_v56 = vsub.f32 1.0, %v634_v55  ;;  %732 = vmatpush.msra.mxu3 %v65_v13  ;;  %v61_v24 = vld [vmem:[#allocation5 + $0xb0] sm:$0xff] }
 0x446   :  { %612 = vmatpush.msra.mxu1 %v885_v8  ;;  %706 = vmatpush.msra.mxu2 %v55_v0 }
 0x447   :  { %v576_v41 = vsel %vm575_vm5, %v918_v1, %v572_v30  ;;  %v54_v1 = vld [vmem:[#allocation5 + $0x40] sm:$0xff]  ;;  %733 = vmatpush.msra.mxu3 %v64_v14 }
 0x448   :  { %613 = vmatpush.msra.mxu1 %v886_v3  ;;  %v581_v34 = vsel %vm578_vm6, %v580_v33, %v576_v41  ;;  %707 = vmatpush.msra.mxu2 %v54_v1 }
 0x449   :  { %v583_v35 = vmul.f32 %v1165_v7, %v581_v34  ;;  %734 = vmatpush.msra.mxu3 %v63_v12  ;;  %v71_v34 = vld [vmem:[#allocation5 + $0x104] ss:$0 sm:$0xff] }
 0x44b   :  { %735 = vmatpush.msra.mxu3 %v62_v26 }
 0x44d   :  { %838 = vmatmul.msk.f32.gmra.mxu1 %vm173_vm2, %v221_v21  ;;  %736 = vmatpush.msra.mxu3 %v61_v24 }
 0x455   :  { %849 = vmatmul.msk.f32.vlgmr.msra.gmra.mxu1 %vm173_vm2, %v582_v32 }
 0x45d   :  { %850 = vmatmul.msk.f32.gmra.mxu1 %vm173_vm2, %v583_v35  ;;  %vm638_vm2 = vweird.f32 %v920_v54 }
 0x4be   :  { %v489_v29 = vpop.f32.mrf.mxu3 }
 0x4c2   :  { %v373_v36 = vpop.f32.mrf.mxu1 }
 0x4c3   :  { %v374_v38 = vadd.f32 %v373_v36, %v1126_v20 }
 0x4c5   :  { %v495_v39 = vadd.f32 %v489_v29, %v374_v38  ;;  %v72_v29 = vld [vmem:[#allocation5 + $0x105] ss:$0 sm:$0xff] }
 0x4c6   :  { %v492_v46 = vpop.f32.mrf.mxu3 }
 0x4ca   :  { %v376_v37 = vpop.f32.mrf.mxu1 }
 0x4cb   :  { %v377_v43 = vadd.f32 %v376_v37, %v1130_v25 }
 0x4cd   :  { %v496_v47 = vadd.f32 %v492_v46, %v377_v43 }
 0x4d2   :  { %v615_v42 = vpop.f32.mrf.mxu1 }
 0x4d3   :  { %v621_v40 = vadd.f32 %v615_v42, %v495_v39 }
 0x4d5   :  { %v623_v18 = vadd.f32 %v621_v40, %v68_v63 }
 0x4d7   :  { %v1227_v45 = vadd.f32 %v623_v18, %v1048_v4 }
 0x4d9   :  { %v627_v7 = vsel %vm82_vm0, %v1227_v45, 0.0  ;;  %v642_v50 = vmul.f32 %v1227_v45, %v1227_v45 }
 0x4da   :  { %628 = vadd.xlane.f32.xlu0 %v627_v7  ;;  %v618_v48 = vpop.f32.mrf.mxu1 }
 0x4db   :  { %v622_v49 = vadd.f32 %v618_v48, %v496_v47  ;;  %v644_v25 = vsel %vm82_vm0, %v642_v50, 0.0  ;;  %v60_v47 = vld [vmem:[#allocation5 + $0xa0] sm:$0xff]  ;;  %v59_v48 = vld [vmem:[#allocation5 + $0x90] sm:$0xff] }
 0x4dc   :  { %737 = vmatpush.msra.mxu3 %v60_v47 }
 0x4dd   :  { %v624_v20 = vadd.f32 %v622_v49, %v68_v63  ;;  %v58_v49 = vld [vmem:[#allocation5 + $0x80] sm:$0xff] }
 0x4de   :  { %738 = vmatpush.msra.mxu3 %v59_v48 }
 0x4df   :  { %v1234_v51 = vadd.f32 %v624_v20, %v1052_v5  ;;  %v636_v5 = vmul.f32 %v920_v54, %v635_v56  ;;  %v69_v20 = vld [vmem:[#allocation5 + $0x102] ss:$0 sm:$0xff] }
 0x4e0   :  { %739 = vmatpush.msra.mxu3 %v58_v49 }
 0x4e1   :  { %v630_v4 = vsel %vm82_vm0, %v1234_v51, 0.0  ;;  %v643_v22 = vmul.f32 %v1234_v51, %v1234_v51  ;;  %v637_v57 = vadd.f32 %v920_v54, %v636_v5 }
 0x4e2   :  { %645 = vadd.xlane.f32.xlu0 %v644_v25  ;;  %631 = vadd.xlane.f32.xlu1 %v630_v4 }
 0x4e3   :  { %v647_v52 = vsel %vm82_vm0, %v643_v22, 0.0  ;;  %v1242_v60 = vsel %vm638_vm2, %v920_v54, %v637_v57 }
 0x4ea   :  { %648 = vadd.xlane.f32.xlu0 %v647_v52 }
 0x54d   :  { %v629_v58 = vpop.xlane.xlu0 %628 }
 0x54e   :  { %v640_v62 = vmul.f32 %v1242_v60, %v629_v58 }
 0x550   :  { %v652_v6 = vmul.f32 %v640_v62, %v640_v62  ;;  %v656_v33 = vsub.f32 %v1227_v45, %v640_v62 }
 0x555   :  { %v646_v2 = vpop.xlane.xlu0 %645  ;;  %v632_v9 = vpop.xlane.xlu1 %631 }
 0x556   :  { %v650_v8 = vmul.f32 %v646_v2, %v1242_v60  ;;  %v641_v3 = vmul.f32 %v1242_v60, %v632_v9 }
 0x558   :  { %v654_v10 = vsub.f32 %v650_v8, %v652_v6  ;;  %v653_v16 = vmul.f32 %v641_v3, %v641_v3  ;;  %v657_v43 = vsub.f32 %v1234_v51, %v641_v3 }
 0x55a   :  { %v658_v11 = vadd.f32 1e-05, %v654_v10 }
 0x55c   :  { %921 = vrsqrt.f32 %v658_v11  ;;  %vm666_vm8 = vweird.f32 %v658_v11 }
 0x55d   :  { %v649_v15 = vpop.xlane.xlu0 %648 }
 0x55e   :  { %v651_v44 = vmul.f32 %v649_v15, %v1242_v60 }
 0x560   :  { %v655_v17 = vsub.f32 %v651_v44, %v653_v16 }
 0x562   :  { %v922_v21 = vpop.eup %921  ;;  %v659_v19 = vadd.f32 1e-05, %v655_v17 }
 0x563   :  { %v661_v27 = vmul.f32 %v922_v21, %v658_v11  ;;  %vm667_vm7 = vweird.f32 %v922_v21 }
 0x564   :  { %923 = vrsqrt.f32 %v659_v19  ;;  %vm668_vm9 = vmor %vm666_vm8, %vm667_vm7  ;;  %vm676_vm11 = vweird.f32 %v659_v19 }
 0x565   :  { %v662_v28 = vmul.f32 %v922_v21, %v661_v27 }
 0x567   :  { %v663_v30 = vmul.f32 0.5, %v662_v28 }
 0x569   :  { %v664_v31 = vsub.f32 1.5, %v663_v30 }
 0x56a   :  { %v924_v32 = vpop.eup %923 }
 0x56b   :  { %v665_v23 = vmul.f32 %v922_v21, %v664_v31  ;;  %v671_v41 = vmul.f32 %v924_v32, %v659_v19  ;;  %vm677_vm10 = vweird.f32 %v924_v32 }
 0x56c   :  { %vm678_vm12 = vmor %vm676_vm11, %vm677_vm10 }
 0x56d   :  { %v669_v35 = vsel %vm668_vm9, %v922_v21, %v665_v23  ;;  %v672_v36 = vmul.f32 %v924_v32, %v671_v41  ;;  %v73_v23 = vld [vmem:[#allocation5 + $0x106] ss:$0 sm:$0xff] }
 0x56e   :  { %v680_v37 = vmul.f32 %v669_v35, %v656_v33  ;;  %v74_v33 = vld [vmem:[#allocation5 + $0x107] ss:$0 sm:$0xff] }
 0x56f   :  { %v673_v38 = vmul.f32 0.5, %v672_v36 }
 0x570   :  { %v682_v39 = vmul.f32 %v680_v37, %v71_v34 }
 0x571   :  { %v674_v63 = vsub.f32 1.5, %v673_v38 }
 0x572   :  { %v684_v42 = vadd.f32 %v682_v39, %v72_v29 }
 0x573   :  { %v675_v40 = vmul.f32 %v924_v32, %v674_v63 }
 0x574   :  { %851 = vmatmul.msk.f32.vlgmr.msra.gmra.mxu2 %vm82_vm0, %v684_v42 }
 0x575   :  { %v679_v18 = vsel %vm678_vm12, %v924_v32, %v675_v40 }
 0x576   :  { %v681_v45 = vmul.f32 %v679_v18, %v657_v43 }
 0x578   :  { %v683_v46 = vmul.f32 %v681_v45, %v71_v34 }
 0x57a   :  { %v685_v7 = vadd.f32 %v683_v46, %v72_v29 }
 0x57c   :  { %852 = vmatmul.msk.f32.gmra.mxu2 %vm82_vm0, %v685_v7 }
 0x5f7   :  { %v709_v50 = vpop.f32.mrf.mxu2 }
 0x5f8   :  { %v710_v25 = vadd.f32 %v709_v50, %v69_v20 }
 0x5fa   :  { %v715_v51 = vmax.f32 %v710_v25, 0.0 }
 0x5fc   :  { %853 = vmatmul.msk.f32.vlgmr.msra.gmra.mxu3 %vm717_vm13, %v715_v51 }
 0x5ff   :  { %v712_v4 = vpop.f32.mrf.mxu2 }
 0x600   :  { %v713_v22 = vadd.f32 %v712_v4, %v69_v20 }
 0x602   :  { %v716_v52 = vmax.f32 %v713_v22, 0.0 }
 0x604   :  { %854 = vmatmul.msk.f32.gmra.mxu3 %vm717_vm13, %v716_v52 }
 0x67f   :  { %v741_v54 = vpop.f32.mrf.mxu3 }
 0x680   :  { %v742_v55 = vadd.f32 %v741_v54, %v70_v53 }
 0x682   :  { %v747_v56 = vadd.f32 %v742_v55, %v684_v42 }
 0x684   :  { %v749_v5 = vsel %vm82_vm0, %v747_v56, 0.0  ;;  %v757_v57 = vmul.f32 %v747_v56, %v747_v56 }
 0x685   :  { %750 = vadd.xlane.f32.xlu2 %v749_v5 }
 0x686   :  { %v759_v58 = vsel %vm82_vm0, %v757_v57, 0.0 }
 0x687   :  { %760 = vadd.xlane.f32.xlu0 %v759_v58  ;;  %v744_v59 = vpop.f32.mrf.mxu3 }
 0x688   :  { %v745_v61 = vadd.f32 %v744_v59, %v70_v53 }
 0x68a   :  { %v748_v62 = vadd.f32 %v745_v61, %v685_v7 }
 0x68c   :  { %v752_v0 = vsel %vm82_vm0, %v748_v62, 0.0  ;;  %v758_v1 = vmul.f32 %v748_v62, %v748_v62 }
 0x68e   :  { %v762_v2 = vsel %vm82_vm0, %v758_v1, 0.0 }
 0x68f   :  { %753 = vadd.xlane.f32.xlu0 %v752_v0 }
 0x697   :  { %763 = vadd.xlane.f32.xlu0 %v762_v2 }
 0x6f8   :  { %v751_v6 = vpop.xlane.xlu2 %750 }
 0x6f9   :  { %v755_v8 = vmul.f32 %v751_v6, %v1242_v60 }
 0x6fa   :  { %v761_v9 = vpop.xlane.xlu0 %760 }
 0x6fb   :  { %v767_v10 = vmul.f32 %v755_v8, %v755_v8  ;;  %v765_v3 = vmul.f32 %v761_v9, %v1242_v60  ;;  %v771_v31 = vsub.f32 %v747_v56, %v755_v8 }
 0x6fd   :  { %v769_v11 = vsub.f32 %v765_v3, %v767_v10 }
 0x6ff   :  { %v773_v13 = vadd.f32 1e-05, %v769_v11 }
 0x701   :  { %925 = vrsqrt.f32 %v773_v13  ;;  %vm781_vm15 = vweird.f32 %v773_v13 }
 0x702   :  { %v754_v14 = vpop.xlane.xlu0 %753 }
 0x703   :  { %v756_v16 = vmul.f32 %v754_v14, %v1242_v60 }
 0x705   :  { %v768_v26 = vmul.f32 %v756_v16, %v756_v16  ;;  %v772_v63 = vsub.f32 %v748_v62, %v756_v16 }
 0x707   :  { %v926_v15 = vpop.eup %925 }
 0x708   :  { %v776_v44 = vmul.f32 %v926_v15, %v773_v13  ;;  %vm782_vm14 = vweird.f32 %v926_v15 }
 0x709   :  { %vm783_vm1 = vmor %vm781_vm15, %vm782_vm14 }
 0x70a   :  { %v777_v12 = vmul.f32 %v926_v15, %v776_v44  ;;  %v764_v17 = vpop.xlane.xlu0 %763 }
 0x70b   :  { %v766_v21 = vmul.f32 %v764_v17, %v1242_v60 }
 0x70c   :  { %v778_v19 = vmul.f32 0.5, %v777_v12 }
 0x70d   :  { %v770_v24 = vsub.f32 %v766_v21, %v768_v26 }
 0x70e   :  { %v779_v27 = vsub.f32 1.5, %v778_v19 }
 0x70f   :  { %v774_v28 = vadd.f32 1e-05, %v770_v24 }
 0x710   :  { %v780_v30 = vmul.f32 %v926_v15, %v779_v27 }
 0x711   :  { %927 = vrsqrt.f32 %v774_v28  ;;  %vm791_vm4 = vweird.f32 %v774_v28 }
 0x712   :  { %v784_v32 = vsel %vm783_vm1, %v926_v15, %v780_v30 }
 0x713   :  { %v795_v41 = vmul.f32 %v784_v32, %v771_v31 }
 0x715   :  { %v797_v34 = vmul.f32 %v795_v41, %v73_v23 }
 0x717   :  { %v928_v35 = vpop.eup %927  ;;  %v799_v36 = vadd.f32 %v797_v34, %v74_v33 }
 0x718   :  { %v786_v37 = vmul.f32 %v928_v35, %v774_v28  ;;  %vm792_vm3 = vweird.f32 %v928_v35 }
 0x719   :  { %801 = vst.msk [vmem:[#allocation7] sm:$0xff] %vm82_vm0, %v799_v36  ;;  %vm793_vm5 = vmor %vm791_vm4, %vm792_vm3 }
 0x71a   :  { %v787_v60 = vmul.f32 %v928_v35, %v786_v37 }
 0x71c   :  { %v788_v38 = vmul.f32 0.5, %v787_v60 }
 0x71e   :  { %v789_v29 = vsub.f32 1.5, %v788_v38 }
 0x720   :  { %v790_v39 = vmul.f32 %v928_v35, %v789_v29 }
 0x722   :  { %v794_v42 = vsel %vm793_vm5, %v928_v35, %v790_v39 }
 0x723   :  { %v796_v40 = vmul.f32 %v794_v42, %v772_v63 }
 0x725   :  { %v798_v43 = vmul.f32 %v796_v40, %v73_v23 }
 0x727   :  { %v800_v18 = vadd.f32 %v798_v43, %v74_v33 }
 0x729   :  { %802 = vst.msk [vmem:[#allocation7 + $0x8] sm:$0xff] %vm82_vm0, %v800_v18 }
 0x72a   :  { %815 = dma.vmem_to_hbm [thread:$0]  %s808_s3, 256, %s810_s6, [#allocation4], %s1008_s17, %s1008_s17, %s1009_s18  }
 0x72b   :  { %1005 = dma.done.wait [#allocation4], 256  }
 0x72c   :  { %1006 = vsyncadd [#allocation4], 4294967040 }
 0x72d   :  { %820 = vsyncpa [#allocation3], 1 }
 0x72e   :  { %821 = vsyncpa [#allocation6], 1 }
 0x72f   :  { %822 = vsyncpa [#allocation4], 1 }

</bundles_post_ra>
